<compile_context>
chip_gen: v7x
topology: tpu7x:2x2x1
jax: 0.10.0
libtpu: 0.0.40
codegen_flags: <defaults>
</compile_context>

<pallas_src>
import functools

import jax
import jax.numpy as jnp
from jax.experimental import pallas as pl
from jax.experimental.pallas import tpu as pltpu


# ---------------------------------------------------------------------------
# Packed-parameter layout: one (96, 16) f32 block, every tensor starting at an
# 8-row-aligned offset.  Weights are PyTorch-native (out_features, in_features)
# so in the (F, B) layout each layer is simply Y = W @ X + b.  Biases: (out, 1).
# ---------------------------------------------------------------------------
_P_ROWS = 96
_P_COLS = 16
_ROW = dict(w1=0, w4=8, w2=24, wml=32, w3=40, b1=48, b2=56, bml=64, b3=72, b4=80)


def _vae_kernel(x_ref, eps_ref, p_ref, z_ref, recon_ref):
    f32 = jnp.float32
    x = x_ref[...].astype(f32)      # (16, BM)  batch-in-lanes
    eps = eps_ref[...].astype(f32)  # (2,  BM)

    # Static slices into the single packed parameter block (one DMA total).
    w1 = p_ref[_ROW["w1"]:_ROW["w1"] + 8, 0:16]     # (8, 16)
    w2 = p_ref[_ROW["w2"]:_ROW["w2"] + 4, 0:8]      # (4, 8)
    wml = p_ref[_ROW["wml"]:_ROW["wml"] + 4, 0:4]   # (4, 4)  rows = [mu ; logvar]
    w3 = p_ref[_ROW["w3"]:_ROW["w3"] + 8, 0:2]      # (8, 2)
    w4 = p_ref[_ROW["w4"]:_ROW["w4"] + 16, 0:8]     # (16, 8)
    b1 = p_ref[_ROW["b1"]:_ROW["b1"] + 8, 0:1]      # (8, 1)
    b2 = p_ref[_ROW["b2"]:_ROW["b2"] + 4, 0:1]      # (4, 1)
    bml = p_ref[_ROW["bml"]:_ROW["bml"] + 4, 0:1]   # (4, 1)
    b3 = p_ref[_ROW["b3"]:_ROW["b3"] + 8, 0:1]      # (8, 1)
    b4 = p_ref[_ROW["b4"]:_ROW["b4"] + 16, 0:1]     # (16, 1)

    # ---- encoder: Linear(16,8) -> ReLU -> Linear(8,4) ----
    h1 = jnp.maximum(jnp.dot(w1, x, preferred_element_type=f32) + b1, 0.0)   # (8, BM)
    en = jnp.dot(w2, h1, preferred_element_type=f32) + b2                    # (4, BM)

    # ---- fused mu/logvar head: rows 0-1 = mu, rows 2-3 = logvar (sublane split,
    #      so no cross-lane move is needed for the reparameterization) ----
    ml = jnp.dot(wml, en, preferred_element_type=f32) + bml                  # (4, BM)
    mu = ml[0:2, :]
    logvar = ml[2:4, :]

    # ---- reparameterize: z = mu + exp(logvar) * eps (variance, as in reference) ----
    z = mu + jnp.exp(logvar) * eps                                           # (2, BM)
    z_ref[...] = z.astype(z_ref.dtype)

    # ---- decoder: Linear(2,8) -> ReLU -> Linear(8,16) -> Sigmoid ----
    # K=2 contraction as VPU broadcast-FMAs (MXU would be ~99% padding here).
    h2 = jnp.maximum(w3[:, 0:1] * z[0:1, :] + w3[:, 1:2] * z[1:2, :] + b3, 0.0)  # (8, BM)
    logits = jnp.dot(w4, h2, preferred_element_type=f32) + b4                    # (16, BM)
    recon_ref[...] = jax.nn.sigmoid(logits).astype(recon_ref.dtype)


def _choose_bm(batch, block_rows):
    """Pick a lane-tile size: multiple of 128 (or the full batch), and split the
    batch into >= 2 grid steps once it is big enough so both v7x TCs get work."""
    block_rows = max(128, (block_rows // 128) * 128)
    if batch < 256:
        return batch                      # single full-extent tile (lane dim == array dim)
    half = -(-batch // 2)                 # ceil(B / 2)
    half = ((half + 127) // 128) * 128    # keep the lane dim a multiple of 128
    return min(block_rows, half)


@functools.partial(jax.jit, static_argnames=("block_rows",))
def vae_forward(x_t, eps_t, packed_params, *, block_rows=2048):
    """Batch-in-lanes VAE forward.

    x_t: (16, B), eps_t: (2, B) — same dtype (f32 or bf16 for bf16 HBM I/O).
    packed_params: (96, 16) f32.
    Returns (z_t: (2, B), recon_t: (16, B)) in x_t's dtype.
    """
    f_in, B = x_t.shape
    assert f_in == 16 and eps_t.shape == (2, B)
    io_dtype = x_t.dtype

    bm = _choose_bm(B, block_rows)
    grid = (pl.cdiv(B, bm),)

    itemsize = jnp.dtype(io_dtype).itemsize
    cost = pl.CostEstimate(
        flops=640 * B,
        transcendentals=18 * B,
        bytes_accessed=36 * B * itemsize + _P_ROWS * _P_COLS * 4,
    )

    z, recon = pl.pallas_call(
        _vae_kernel,
        out_shape=(
            jax.ShapeDtypeStruct((2, B), io_dtype),
            jax.ShapeDtypeStruct((16, B), io_dtype),
        ),
        grid=grid,
        in_specs=[
            pl.BlockSpec((16, bm), lambda i: (0, i)),             # x tile (lane-dense)
            pl.BlockSpec((2, bm), lambda i: (0, i)),              # eps tile
            pl.BlockSpec((_P_ROWS, _P_COLS), lambda i: (0, 0)),   # packed params (reused)
        ],
        out_specs=(
            pl.BlockSpec((2, bm), lambda i: (0, i)),              # z (lane-dense store)
            pl.BlockSpec((16, bm), lambda i: (0, i)),             # recon (lane-dense store)
        ),
        compiler_params=pltpu.CompilerParams(
            dimension_semantics=("parallel",),   # megacore: batch grid split over 2 TCs on v7x
        ),
        cost_estimate=cost,
    )(x_t, eps_t, packed_params)
    return z, recon


def init_params(key):
    """PyTorch nn.Linear init: U(-1/sqrt(fan_in), 1/sqrt(fan_in)).
    Weights stored PyTorch-native (out, in); biases as (out, 1)."""
    def linear(k, fan_in, fan_out):
        kw, kb = jax.random.split(k)
        bound = 1.0 / jnp.sqrt(float(fan_in))
        w = jax.random.uniform(kw, (fan_out, fan_in), jnp.float32, -bound, bound)
        b = jax.random.uniform(kb, (fan_out, 1), jnp.float32, -bound, bound)
        return w, b

    ks = jax.random.split(key, 6)
    w1, b1 = linear(ks[0], 16, 8)
    w2, b2 = linear(ks[1], 8, 4)
    wmu, bmu = linear(ks[2], 4, 2)
    wlv, blv = linear(ks[3], 4, 2)
    w3, b3 = linear(ks[4], 2, 8)
    w4, b4 = linear(ks[5], 8, 16)
    return dict(w1=w1, b1=b1, w2=w2, b2=b2, wmu=wmu, bmu=bmu,
                wlv=wlv, blv=blv, w3=w3, b3=b3, w4=w4, b4=b4)


def pack_params(p):
    """Pack all weights/biases into one (96, 16) f32 block (single DMA)."""
    blk = jnp.zeros((_P_ROWS, _P_COLS), jnp.float32)

    def put(b, name, val):
        r = _ROW[name]
        rows, cols = val.shape
        return b.at[r:r + rows, 0:cols].set(val)

    blk = put(blk, "w1", p["w1"])
    blk = put(blk, "w2", p["w2"])
    blk = put(blk, "wml", jnp.concatenate([p["wmu"], p["wlv"]], axis=0))  # (4, 4)
    blk = put(blk, "w3", p["w3"])
    blk = put(blk, "w4", p["w4"])
    blk = put(blk, "b1", p["b1"])
    blk = put(blk, "b2", p["b2"])
    blk = put(blk, "bml", jnp.concatenate([p["bmu"], p["blv"]], axis=0))  # (4, 1)
    blk = put(blk, "b3", p["b3"])
    blk = put(blk, "b4", p["b4"])
    return blk


def vae_forward_ref(x_t, eps_t, p):
    """Pure-JAX reference (mirrors the PyTorch forward) in the same (F, B) layout."""
    h1 = jnp.maximum(p["w1"] @ x_t + p["b1"], 0.0)
    en = p["w2"] @ h1 + p["b2"]
    mu = p["wmu"] @ en + p["bmu"]
    var = jnp.exp(p["wlv"] @ en + p["blv"])
    z = mu + var * eps_t
    h2 = jnp.maximum(p["w3"] @ z + p["b3"], 0.0)
    recon = jax.nn.sigmoid(p["w4"] @ h2 + p["b4"])
    return z, recon


if __name__ == "__main__":
    B = 256   # small; still gives a 2-step batch grid (bm=128) so megacore path is exercised

    key = jax.random.PRNGKey(0)
    kx, keps, kp = jax.random.split(key, 3)
    # Batch-in-lanes layout: (features, batch)
    x_t = jax.random.uniform(kx, (16, B), jnp.float32)        # input in [0, 1)
    eps_t = jax.random.normal(keps, (2, B), jnp.float32)      # deterministic stand-in for np.random.normal

    params = init_params(kp)
    packed = pack_params(params)

    # ---- f32 HBM I/O path ----
    z, recon = vae_forward(x_t, eps_t, packed, block_rows=2048)
    jax.block_until_ready((z, recon))
    z_ref, recon_ref = vae_forward_ref(x_t, eps_t, params)
    assert z.shape == (2, B) and recon.shape == (16, B)
    assert jnp.allclose(z, z_ref, atol=1e-3, rtol=1e-3)
    assert jnp.allclose(recon, recon_ref, atol=1e-3, rtol=1e-3)

    # ---- bf16 HBM I/O path (memory-bound kernel: halves HBM traffic; compute stays f32) ----
    x_bf = x_t.astype(jnp.bfloat16)
    eps_bf = eps_t.astype(jnp.bfloat16)
    z16, recon16 = vae_forward(x_bf, eps_bf, packed, block_rows=2048)
    jax.block_until_ready((z16, recon16))
    z_ref16, recon_ref16 = vae_forward_ref(x_bf.astype(jnp.float32),
                                           eps_bf.astype(jnp.float32), params)
    assert jnp.allclose(z16.astype(jnp.float32), z_ref16, atol=5e-2, rtol=5e-2)
    assert jnp.allclose(recon16.astype(jnp.float32), recon_ref16, atol=5e-2, rtol=5e-2)

    print("KERNEL_OK")
</pallas_src>

<mosaic_0001>
module attributes {stable_mosaic.version = 11 : i64} {
  func.func @_vae_kernel(%arg0: i32, %arg1: memref<16x128xf32, #tpu.memory_space<vmem>>, %arg2: memref<2x128xf32, #tpu.memory_space<vmem>>, %arg3: memref<96x16xf32, #tpu.memory_space<vmem>>, %arg4: memref<2x128xf32, #tpu.memory_space<vmem>>, %arg5: memref<16x128xf32, #tpu.memory_space<vmem>>) attributes {dimension_semantics = [#tpu.dimension_semantics<parallel>], iteration_bounds = array<i64: 2>, scalar_prefetch = 0 : i64, scratch_operands = 0 : i64, tpu.core_type = #tpu.core_type<tc>, window_params = [{transform_indices = @transform_0, window_bounds = array<i64: 16, 128>}, {transform_indices = @transform_1, window_bounds = array<i64: 2, 128>}, {pipeline_mode = #tpu.pipeline_mode<synchronous>, transform_indices = @transform_2, window_bounds = array<i64: 96, 16>}, {transform_indices = @transform_3, window_bounds = array<i64: 2, 128>}, {transform_indices = @transform_4, window_bounds = array<i64: 16, 128>}]} {
    %c0 = arith.constant 0 : index
    %c0_0 = arith.constant 0 : index
    %0 = vector.load %arg1[%c0, %c0_0] : memref<16x128xf32, #tpu.memory_space<vmem>>, vector<16x128xf32>
    %c0_1 = arith.constant 0 : index
    %c0_2 = arith.constant 0 : index
    %1 = vector.load %arg2[%c0_1, %c0_2] : memref<2x128xf32, #tpu.memory_space<vmem>>, vector<2x128xf32>
    %c0_3 = arith.constant 0 : index
    %c0_4 = arith.constant 0 : index
    %2 = vector.load %arg3[%c0_3, %c0_4] : memref<96x16xf32, #tpu.memory_space<vmem>>, vector<8x16xf32>
    %c24 = arith.constant 24 : index
    %c0_5 = arith.constant 0 : index
    %3 = vector.load %arg3[%c24, %c0_5] : memref<96x16xf32, #tpu.memory_space<vmem>>, vector<4x8xf32>
    %c32 = arith.constant 32 : index
    %c0_6 = arith.constant 0 : index
    %4 = vector.load %arg3[%c32, %c0_6] : memref<96x16xf32, #tpu.memory_space<vmem>>, vector<4x4xf32>
    %c40 = arith.constant 40 : index
    %c0_7 = arith.constant 0 : index
    %5 = vector.load %arg3[%c40, %c0_7] : memref<96x16xf32, #tpu.memory_space<vmem>>, vector<8x2xf32>
    %c8 = arith.constant 8 : index
    %c0_8 = arith.constant 0 : index
    %6 = vector.load %arg3[%c8, %c0_8] : memref<96x16xf32, #tpu.memory_space<vmem>>, vector<16x8xf32>
    %c48 = arith.constant 48 : index
    %c0_9 = arith.constant 0 : index
    %7 = vector.load %arg3[%c48, %c0_9] : memref<96x16xf32, #tpu.memory_space<vmem>>, vector<8x1xf32>
    %c56 = arith.constant 56 : index
    %c0_10 = arith.constant 0 : index
    %8 = vector.load %arg3[%c56, %c0_10] : memref<96x16xf32, #tpu.memory_space<vmem>>, vector<4x1xf32>
    %c64 = arith.constant 64 : index
    %c0_11 = arith.constant 0 : index
    %9 = vector.load %arg3[%c64, %c0_11] : memref<96x16xf32, #tpu.memory_space<vmem>>, vector<4x1xf32>
    %c72 = arith.constant 72 : index
    %c0_12 = arith.constant 0 : index
    %10 = vector.load %arg3[%c72, %c0_12] : memref<96x16xf32, #tpu.memory_space<vmem>>, vector<8x1xf32>
    %c80 = arith.constant 80 : index
    %c0_13 = arith.constant 0 : index
    %11 = vector.load %arg3[%c80, %c0_13] : memref<96x16xf32, #tpu.memory_space<vmem>>, vector<16x1xf32>
    %cst = arith.constant dense<0.000000e+00> : vector<8x128xf32>
    %12 = tpu.matmul %2, %0, %cst {dimension_numbers = #tpu.dot_dimension_numbers<[1], [0], [0], [1], [0, 0, 1, 1], [], []>} : vector<8x16xf32>, vector<16x128xf32>, vector<8x128xf32> -> vector<8x128xf32>
    %13 = vector.broadcast %7 : vector<8x1xf32> to vector<8x128xf32>
    %14 = arith.addf %12, %13 : vector<8x128xf32>
    %cst_14 = arith.constant 0.000000e+00 : f32
    %15 = vector.broadcast %cst_14 : f32 to vector<8x128xf32>
    %16 = arith.maximumf %14, %15 : vector<8x128xf32>
    %cst_15 = arith.constant dense<0.000000e+00> : vector<4x128xf32>
    %17 = tpu.matmul %3, %16, %cst_15 {dimension_numbers = #tpu.dot_dimension_numbers<[1], [0], [0], [1], [0, 0, 1, 1], [], []>} : vector<4x8xf32>, vector<8x128xf32>, vector<4x128xf32> -> vector<4x128xf32>
    %18 = vector.broadcast %8 : vector<4x1xf32> to vector<4x128xf32>
    %19 = arith.addf %17, %18 : vector<4x128xf32>
    %cst_16 = arith.constant dense<0.000000e+00> : vector<4x128xf32>
    %20 = tpu.matmul %4, %19, %cst_16 {dimension_numbers = #tpu.dot_dimension_numbers<[1], [0], [0], [1], [0, 0, 1, 1], [], []>} : vector<4x4xf32>, vector<4x128xf32>, vector<4x128xf32> -> vector<4x128xf32>
    %21 = vector.broadcast %9 : vector<4x1xf32> to vector<4x128xf32>
    %22 = arith.addf %20, %21 : vector<4x128xf32>
    %23 = vector.extract_strided_slice %22 {offsets = [0, 0], sizes = [2, 128], strides = [1, 1]} : vector<4x128xf32> to vector<2x128xf32>
    %24 = vector.extract_strided_slice %22 {offsets = [2, 0], sizes = [2, 128], strides = [1, 1]} : vector<4x128xf32> to vector<2x128xf32>
    %25 = math.exp %24 : vector<2x128xf32>
    %26 = arith.mulf %25, %1 : vector<2x128xf32>
    %27 = arith.addf %23, %26 : vector<2x128xf32>
    %c0_17 = arith.constant 0 : index
    %c0_18 = arith.constant 0 : index
    %28 = vector.load %arg4[%c0_17, %c0_18] : memref<2x128xf32, #tpu.memory_space<vmem>>, vector<2x128xf32>
    tpu.vector_store %arg4[%c0_17, %c0_18], %27 {strides = array<i32>} : memref<2x128xf32, #tpu.memory_space<vmem>>, vector<2x128xf32>,
    %29 = vector.extract_strided_slice %5 {offsets = [0, 0], sizes = [8, 1], strides = [1, 1]} : vector<8x2xf32> to vector<8x1xf32>
    %30 = vector.extract_strided_slice %27 {offsets = [0, 0], sizes = [1, 128], strides = [1, 1]} : vector<2x128xf32> to vector<1x128xf32>
    %31 = vector.broadcast %29 : vector<8x1xf32> to vector<8x128xf32>
    %32 = vector.broadcast %30 : vector<1x128xf32> to vector<8x128xf32>
    %33 = arith.mulf %31, %32 : vector<8x128xf32>
    %34 = vector.extract_strided_slice %5 {offsets = [0, 1], sizes = [8, 1], strides = [1, 1]} : vector<8x2xf32> to vector<8x1xf32>
    %35 = vector.extract_strided_slice %27 {offsets = [1, 0], sizes = [1, 128], strides = [1, 1]} : vector<2x128xf32> to vector<1x128xf32>
    %36 = vector.broadcast %34 : vector<8x1xf32> to vector<8x128xf32>
    %37 = vector.broadcast %35 : vector<1x128xf32> to vector<8x128xf32>
    %38 = arith.mulf %36, %37 : vector<8x128xf32>
    %39 = arith.addf %33, %38 : vector<8x128xf32>
    %40 = vector.broadcast %10 : vector<8x1xf32> to vector<8x128xf32>
    %41 = arith.addf %39, %40 : vector<8x128xf32>
    %cst_19 = arith.constant 0.000000e+00 : f32
    %42 = vector.broadcast %cst_19 : f32 to vector<8x128xf32>
    %43 = arith.maximumf %41, %42 : vector<8x128xf32>
    %cst_20 = arith.constant dense<0.000000e+00> : vector<16x128xf32>
    %44 = tpu.matmul %6, %43, %cst_20 {dimension_numbers = #tpu.dot_dimension_numbers<[1], [0], [0], [1], [0, 0, 1, 1], [], []>} : vector<16x8xf32>, vector<8x128xf32>, vector<16x128xf32> -> vector<16x128xf32>
    %45 = vector.broadcast %11 : vector<16x1xf32> to vector<16x128xf32>
    %46 = arith.addf %44, %45 : vector<16x128xf32>
    %47 = arith.negf %46 : vector<16x128xf32>
    %48 = math.exp %47 : vector<16x128xf32>
    %cst_21 = arith.constant 1.000000e+00 : f32
    %49 = vector.broadcast %cst_21 : f32 to vector<16x128xf32>
    %50 = arith.addf %49, %48 : vector<16x128xf32>
    %51 = arith.divf %49, %50 : vector<16x128xf32>
    %c0_22 = arith.constant 0 : index
    %c0_23 = arith.constant 0 : index
    %52 = vector.load %arg5[%c0_22, %c0_23] : memref<16x128xf32, #tpu.memory_space<vmem>>, vector<16x128xf32>
    tpu.vector_store %arg5[%c0_22, %c0_23], %51 {strides = array<i32>} : memref<16x128xf32, #tpu.memory_space<vmem>>, vector<16x128xf32>,
    return
  }
  func.func @transform_0(%arg0: i32) -> (i32, i32) {
    %c0_i32 = arith.constant 0 : i32
    %c0_i32_0 = arith.constant 0 : i32
    return %c0_i32, %arg0 : i32, i32
  }
  func.func @transform_1(%arg0: i32) -> (i32, i32) {
    %c0_i32 = arith.constant 0 : i32
    %c0_i32_0 = arith.constant 0 : i32
    return %c0_i32, %arg0 : i32, i32
  }
  func.func @transform_2(%arg0: i32) -> (i32, i32) {
    %c0_i32 = arith.constant 0 : i32
    %c0_i32_0 = arith.constant 0 : i32
    %c0_i32_1 = arith.constant 0 : i32
    return %c0_i32, %c0_i32_0 : i32, i32
  }
  func.func @transform_3(%arg0: i32) -> (i32, i32) {
    %c0_i32 = arith.constant 0 : i32
    %c0_i32_0 = arith.constant 0 : i32
    return %c0_i32, %arg0 : i32, i32
  }
  func.func @transform_4(%arg0: i32) -> (i32, i32) {
    %c0_i32 = arith.constant 0 : i32
    %c0_i32_0 = arith.constant 0 : i32
    return %c0_i32, %arg0 : i32, i32
  }
}

</mosaic_0001>

<bundles_post_ra>
// kernel: vae_forward.1
= control target key start
LH: loop header
LB: loop body
LE: loop exit
PB: predicated region body
PF: predicated region fallthrough
CT: control target
= control target key end

     0   :  { %10 = vsyncpa [#allocation4], 0  ;;  %s1248_s0 = inlined_call_operand.vmem [shape: f32[16,256], index: 0, kind: input, shape index: {}]   ;;  %s1249_s1 = inlined_call_operand.vmem [shape: f32[2,256], index: 1, kind: input, shape index: {}]   ;;  %s1250_s2 = inlined_call_operand.vmem [shape: f32[96,16], index: 2, kind: input, shape index: {}]   ;;  %s1251_s3 = inlined_call_operand.hbm [shape: f32[2,256], index: 3, kind: output, shape index: {0}]   ;;  %s1252_s4 = inlined_call_operand.hbm [shape: f32[16,256], index: 4, kind: output, shape index: {1}]  }
   0x1   :  { %12 = vsyncpa [#allocation4 + $0x1], 0 }
   0x2   :  { %13 = vsyncpa [#allocation6], 0 }
   0x3   :  { %15 = vsyncpa [#allocation6 + $0x1], 0  ;;  %s1061_s15 = smov 0   ;;  %s1063_s16 = smov 0  }
   0x4   :  { %s1065_s17 = smov 0   ;;  %s1067_s18 = smov 0  }
   0x5 LB: > { %s1082_s19 = sadd.s32 4294967295, %s1024_s18   ;;  %s805_s20 = sadd.s32 4294967294, %s1024_s18   ;;  %s1024_s18 = sphi %s1067_s18, %s1258_s18   ;;  %s1020_s17 = sphi %s1065_s17, %s1257_s17   ;;  %s1016_s16 = sphi %s1063_s16, %s1256_s16   ;;  %s1012_s15 = sphi %s1061_s15, %s1255_s15  }
   0x6   : > { %s1086_s21 = sadd.s32 1, %s1024_s18   ;;  %s28_s22 = sadd.s32 1, %s1020_s17 }
   0x7   : > { %s25_s23 = ssub.s32 %s1024_s18, %s1086_s21  ;;  %p35_p0 = scmp.ne.s32.totalorder %s1020_s17, %s1016_s16 }
   0x8   : > { %p26_p1 = scmp.eq.s32.totalorder %s25_s23, 0  ;;  %p36_p2 = scmp.eq.s32.totalorder %s1024_s18, 0 }
   0x9   : > { %p112_p3 = scmp.eq.s32.totalorder %s1082_s19, 1  ;;  %p117_p4 = scmp.ne.s32.totalorder %s1016_s16, %s1012_s15 }
   0xa   : > { %s1098_s24 = scalar_select %p26_p1, %s1020_s17, %s28_s22  }
   0xb   : > { %p37_p5 = por %p36_p2, %p35_p0  ;;  %p1100_p6 = por %p112_p3, %p35_p0 }
   0xc   : > { %p118_p7 = scmp.eq.s32.totalorder %s805_s20, 1  ;;  %p807_p9 = scmp.ge.s32.totalorder %s1024_s18, 2 }
   0xe   : > { %p1104_p8 = por %p118_p7, %p117_p4  ;;  %163 = sbr.rel (%p807_p9) target bundleno = 28 (0x1c), region = 20 }
  0x15   : > { %166 = sbr.rel (!%p37_p5) target bundleno = 28 (0x1c), region = 24  ;;  %s168_s27 = sand.u32 (%p37_p5), 1, %s1020_s17  }
  0x16   : > { %s809_s28 = sshll.u32 (%p37_p5), %s1024_s18, 3  ;;  %s808_s29 = sshll.u32 (%p37_p5), %s168_s27, 4 }
  0x17   : > { %s172_s6 = scalar_lea.vmem (%p37_p5), %s1248_s0, %s809_s28  ;;  %s170_s7 = scalar_lea.vmem (%p37_p5), [#allocation2], %s808_s29 }
  0x18   : > { %v202_v0 = vld [vmem:[%s172_s6] sm:$0xff] (%p37_p5)  ;;  %v204_v1 = vld [vmem:[%s172_s6 + $0x10] sm:$0xff] (%p37_p5) }
  0x19   : > { %203 = vst [vmem:[%s170_s7] sm:$0xff] (%p37_p5), %v202_v0  ;;  %205 = vst [vmem:[%s170_s7 + $0x8] sm:$0xff] (%p37_p5), %v204_v1 }
  0x1c PF: > { %p810_p10 = scmp.ge.s32.totalorder %s1024_s18, 1  ;;  %p217_p11 = scmp.lt.s32.totalorder %s1024_s18, 3 }
  0x1e   : > { %p218_p12 = pnand %p810_p10, %p217_p11 }
  0x1f   : > { %s1119_s8 = sand.u32 (!%p218_p12), 1, %s1016_s16   ;;  %v1026_v2 = vmov (!%p218_p12), 0.0|0.0   ;;  %vm1027_vm0 = vmmov (!%p218_p12), 0   ;;  %v1028_v3 = vmov (!%p218_p12), 0.0   ;;  %v271_v4 = vld [vmem:[%s1250_s2 + $0x30] sm:$0xff] (!%p218_p12)  ;;  %v1029_v5 = vmov (!%p218_p12), 0  }
  0x20   : > { %221 = sbr.rel (%p218_p12) target bundleno = 974 (0x3ce), region = 66  ;;  %861 = vmatprep.subr.bf16.mxu0 (!%p218_p12), %v1026_v2  ;;  %s811_s9 = sshll.u32 (!%p218_p12), %s1119_s8, 4  ;;  %843 = vmatprep.mubr.msk.f32.mxu0 (!%p218_p12), %vm1027_vm0, %v1028_v3  ;;  %v272_v9 = vld [vmem:[%s1250_s2 + $0x38] sm:$0xf] (!%p218_p12)  ;;  %v265_v10 = vld [vmem:[%s1250_s2] sm:$0xff] (!%p218_p12)  ;;  %vm282_vm1 = vcmask (!%p218_p12), 130048   ;;  %v535_v35 = vlaneseq (!%p218_p12) }
  0x21   : > { %916 = vset.pattern.permute.xlu0 (!%p218_p12), %v1029_v5  ;;  %846 = vmatprep.subr.mxu1 (!%p218_p12), %v1028_v3  ;;  %s226_s12 = scalar_lea.vmem (!%p218_p12), [#allocation2], %s811_s9  ;;  %v266_v16 = vld [vmem:[%s1250_s2 + $0x18] sm:$0xf] (!%p218_p12)  ;;  %vm362_vm2 = vcmask (!%p218_p12), 64512   ;;  %v273_v17 = vld [vmem:[%s1250_s2 + $0x40] sm:$0xf] (!%p218_p12) }
  0x22   : > { %v262_v6 = vld [vmem:[%s226_s12] sm:$0xff] (!%p218_p12)  ;;  %v263_v7 = vld [vmem:[%s226_s12 + $0x8] sm:$0xff] (!%p218_p12)  ;;  %279 = vperm.xlu0 (!%p218_p12), %916, %v271_v4   ;;  %848 = vmatprep.mubr.msk.f32.mxu1 (!%p218_p12), %vm1027_vm0, %v1028_v3  ;;  %v1030_v19 = vmov (!%p218_p12), 1   ;;  %vm445_vm3 = vcmask (!%p218_p12), 1043456   ;;  %vm441_vm4 = vcmask (!%p218_p12), 31744   ;;  %p258_p13 = scmp.lt.s32.totalorder (!%p218_p12), %s1082_s19, 1 }
  0x23   : > { %v862_v8 = vpack.c.bf16 (!%p218_p12), %v263_v7, %v262_v6  ;;  %917 = vset.pattern.permute.xlu1 (!%p218_p12), %v1029_v5  ;;  %v268_v18 = vld [vmem:[%s1250_s2 + $0x28] sm:$0xff] (!%p218_p12)  ;;  %v275_v21 = vld [vmem:[%s1250_s2 + $0x50] sm:$0xff] (!%p218_p12)  ;;  %v267_v26 = vld [vmem:[%s1250_s2 + $0x20] sm:$0xf] (!%p218_p12)  ;;  %v536_v37 = vshrl.u32 (!%p218_p12), %v535_v35, 7  ;;  %s812_s6 = sshll.u32 (!%p218_p12), %s1119_s8, 1 }
  0x24   : > { %438 = vperm.xlu1 (!%p218_p12), %917, %v273_v17   ;;  %v274_v20 = vld [vmem:[%s1250_s2 + $0x48] sm:$0xff] (!%p218_p12)  ;;  %v276_v28 = vld [vmem:[%s1250_s2 + $0x58] sm:$0xff] (!%p218_p12)  ;;  %s250_s7 = scalar_lea.vmem (!%p218_p12), [#allocation3], %s812_s6  ;;  %v270_v54 = vld [vmem:[%s1250_s2 + $0x10] sm:$0xff] (!%p218_p12)  ;;  %s825_s12 = sshll.u32 (!%p218_p12), %s1082_s19, 5 }
  0x25   : > { %863 = vmatpush3.bf16.msra.mxu0 (!%p218_p12), %v862_v8  ;;  %v269_v27 = vld [vmem:[%s1250_s2 + $0x8] sm:$0xff] (!%p218_p12)  ;;  %v537_v41 = vsub.s32 (!%p218_p12), 0, %v536_v37  ;;  %v546_v42 = vsub.s32 (!%p218_p12), 1, %v536_v37  ;;  %s681_s13 = sshll.u32 (!%p218_p12), %s250_s7, 4  ;;  %s1176_s22 = scalar_lea.hbm (!%p218_p12), %s1251_s3, %s825_s12  ;;  %s682_s13 = int_to_ptr.vmem [resolvable:$true] %s681_s13 }
  0x26   : > { %359 = vperm.xlu0 (!%p218_p12), %916, %v272_v9   ;;  %s663_s23 = scalar_lea.sflag (!%p218_p12), [#allocation4], %s1119_s8 }
  0x27   : > { %s259_s27 = scalar_select %p258_p13, %s1082_s19, 1 }
  0x28   : > { %844 = vmatmul.mubr.msk.f32.vlgmr.msra.gmra.mrb[0].mxu0 %vm282_vm1, %v265_v10  ;;  %532 = vperm.xlu1 %917, %v268_v18  }
  0x29   : > { %858 = vmatprep.mubr.msk.f32.mxu0 %vm362_vm2, %v269_v27  ;;  %s814_s28 = sshll.u32 %s259_s27, 1  ;;  %s930_s27 = scalar_lea.vmem %s682_s13, 32 }
  0x2a   : > { %918 = vset.pattern.permute.xlu0 %v1030_v19  ;;  %s261_s5 = scalar_lea.vmem %s1249_s1, %s814_s28  ;;  %p931_p0 = scmp.ne.s32.totalorder %s682_s13, %s930_s27 }
  0x2b   : > { %541 = vperm.xlu0 %918, %v268_v18   ;;  %v264_v34 = vld [vmem:[%s261_s5] sm:$0x3]  ;;  %s1031_s28 = smov [#allocation3]  }
  0x2c   : > { %552 = vperm.xlu1 %917, %v274_v20   ;;  %v522_v36 = vrot.slane %v264_v34, 6  ;;  %p932_p1 = pnand %p931_p0, %p1100_p6  ;;  %s934_s29 = sshll.u32 %s1031_s28, 4  ;;  %s935_s29 = int_to_ptr.vmem [resolvable:$false] %s934_s29 }
  0x2d   : > { %s936_s30 = scalar_lea.vmem %s935_s29, 64  ;;  %p937_p3 = scmp.lt.s32.totalorder %s682_s13, %s935_s29 }
  0x2e   : > { %p933_p2 = pneg %p932_p1  ;;  %p938_p4 = scmp.lt.s32.totalorder %s936_s30, %s930_s27 }
  0x2f   : > { %919 = vset.pattern.permute.xlu0 %v1029_v5 }
  0x30   : > { %559 = vperm.xlu1 %917, %v275_v21   ;;  %564 = vperm.xlu0 %919, %v276_v28   ;;  %p939_p5 = por %p938_p4, %p937_p3 }
  0x32   : > { %p940_p7 = pnand %p939_p5, %p933_p2 }
  0xa1   : > { %v280_v11 = vpop.permute.xlu0 %279 }
  0xa3   : > { %v439_v29 = vpop.permute.xlu1 %438 }
  0xa5   : > { %v360_v22 = vpop.permute.xlu0 %359 }
  0xa7   : > { %v533_v44 = vpop.permute.xlu1 %532 }
  0xaa   : > { %v542_v45 = vpop.permute.xlu0 %541 }
  0xab   : > { %v553_v51 = vpop.permute.xlu1 %552 }
  0xfb   : > { %v352_v12 = vpop.f32.mrb[0].mxu0 }
  0xfc   : > { %v353_v13 = vadd.f32 %v352_v12, %v280_v11  ;;  %v845_v14 = vpop.f32.mrb[1].mxu0 }
  0xfe   : > { %v356_v15 = vmax.f32 %v353_v13, 0.0 }
 0x100   : > { %847 = vmatpush3.msra.mxu1 %v356_v15 }
 0x101   : > { %849 = vmatmul.mubr.msk.f32.vlgmr.msra.gmra.mrb[0].mxu1 %vm362_vm2, %v266_v16  ;;  %851 = vmatprep.subr.mxu1 %v1028_v3 }
 0x102   : > { %853 = vmatprep.mubr.msk.f32.mxu1 %vm1027_vm0, %v1028_v3 }
 0x1d4   : > { %v432_v23 = vpop.f32.mrb[0].mxu1 }
 0x1d5   : > { %v433_v24 = vadd.f32 %v432_v23, %v360_v22  ;;  %v850_v25 = vpop.f32.mrb[1].mxu1 }
 0x1d7   : > { %852 = vmatpush3.msk.msra.mxu1 %vm445_vm3, %v433_v24 }
 0x1d8   : > { %854 = vmatmul.mubr.msk.f32.vlgmr.msra.gmra.mrb[2].mxu1 %vm441_vm4, %v267_v26 }
 0x2ab   : > { %v515_v30 = vpop.f32.mrb[2].mxu1 }
 0x2ac   : > { %v516_v31 = vadd.f32 %v515_v30, %v439_v29  ;;  %v855_v32 = vpop.f32.mrb[3].mxu1 }
 0x2ae   : > { %v519_v33 = vmul.f32 1.442695, %v516_v31 }
 0x2b0   : > { %920 = vpow2.f32 %v519_v33 }
 0x2ba   : > { %v921_v38 = vpop.eup %920 }
 0x2bb   : > { %v524_v39 = vmul.f32 %v921_v38, %v522_v36 }
 0x2bd   : > { %v526_v40 = vrot.slane %v524_v39, 2 }
 0x2bf   : > { %v528_v43 = vadd.f32 %v526_v40, %v516_v31 }
 0x2c1   : > { %v538_v46 = vrot.slane %v528_v43, %v537_v41  ;;  %v547_v47 = vrot.slane %v528_v43, %v546_v42  ;;  %529 = vst [vmem:[%s250_s7] sm:$0x3] %v528_v43 }
 0x2c3   : > { %v539_v48 = vmul.f32 %v538_v46, %v533_v44  ;;  %v548_v49 = vmul.f32 %v547_v47, %v542_v45 }
 0x2c5   : > { %v549_v50 = vadd.f32 %v548_v49, %v539_v48 }
 0x2c7   : > { %v555_v52 = vadd.f32 %v553_v51, %v549_v50 }
 0x2c9   : > { %v556_v53 = vmax.f32 %v555_v52, 0.0 }
 0x2cb   : > { %856 = vmatprep.subr.mxu0 %v556_v53 }
 0x2cc   : > { %857 = vmatpush3.msra.mxu0 %v556_v53 }
 0x2cd   : > { %859 = vmatmul.mubr.msk.f32.vlgmr.msra.gmra.mrb[2].mxu0 %vm362_vm2, %v270_v54 }
 0x2ce   : > { %943 = shalt.err (!%p940_p7)
}
 0x2cf   : > { %s944_s5 = scalar_lea.hbm %s1176_s22, 32  ;;  %s948_s10 = scalar_lea.hbm %s1251_s3, 64 }
 0x2d0   : > { %p945_p10 = scmp.ne.s32.totalorder %s1176_s22, %s944_s5  ;;  %p949_p13 = scmp.lt.u32.totalorder %s1176_s22, %s1251_s3 }
 0x2d1   : > { %p950_p0 = scmp.lt.u32.totalorder %s948_s10, %s944_s5  ;;  %p952_p2 = scmp.lt.u32.totalorder %s944_s5, %s1176_s22 }
 0x2d2   : > { %p946_p11 = pnand %p945_p10, %p1100_p6 }
 0x2d3   : > { %p951_p1 = por %p950_p0, %p949_p13 }
 0x2d4   : > { %p947_p12 = pneg %p946_p11 }
 0x2d5   : > { %p953_p3 = por %p952_p2, %p951_p1 }
 0x2d7   : > { %p954_p4 = pnand %p953_p3, %p947_p12 }
 0x2d9   : > { %957 = shalt.err (!%p954_p4)
}
 0x2da   : > { %864 = dma.vmem_to_hbm [thread:$0]  (%p1100_p6), %s682_s13, 32, %s1176_s22, %s663_s23   ;;  %v565_v55 = vpop.permute.xlu0 %564  ;;  %v560_v57 = vpop.permute.xlu1 %559 }
 0x2db   : > { %s257_s13 = scalar_lea.vmem [#allocation5], %s811_s9  ;;  %s826_s20 = sshll.u32 %s1082_s19, 7 }
 0x2dc   : > { %s693_s14 = sshll.u32 %s257_s13, 4  ;;  %s1204_s27 = scalar_lea.hbm %s1252_s4, %s826_s20  ;;  %s1199_s14 = int_to_ptr.vmem [resolvable:$true] %s693_s14 }
 0x2dd   : > { %s668_s28 = scalar_lea.sflag [#allocation6], %s1119_s8  ;;  %s958_s29 = scalar_lea.vmem %s1199_s14, 256 }
 0x2de   : > { %p959_p5 = scmp.ne.s32.totalorder %s1199_s14, %s958_s29  ;;  %s1032_s19 = smov [#allocation5]  }
 0x2df   : > { %s962_s9 = sshll.u32 %s1032_s19, 4  ;;  %s963_s9 = int_to_ptr.vmem [resolvable:$false] %s962_s9 }
 0x2e0   : > { %p960_p7 = pnand %p959_p5, %p1100_p6  ;;  %s964_s30 = scalar_lea.vmem %s963_s9, 512 }
 0x2e1   : > { %p965_p11 = scmp.lt.s32.totalorder %s1199_s14, %s963_s9  ;;  %p966_p12 = scmp.lt.s32.totalorder %s964_s30, %s958_s29 }
 0x2e2   : > { %p961_p10 = pneg %p960_p7 }
 0x2e3   : > { %p967_p13 = por %p966_p12, %p965_p11 }
 0x2e5   : > { %p968_p0 = pnand %p967_p13, %p961_p10 }
 0x3a0   : > { %v860_v56 = vpop.f32.mrb[2].mxu0 }
 0x3a1   : > { %v639_v58 = vpop.f32.mrb[3].mxu0  ;;  %v645_v59 = vadd.f32 %v860_v56, %v565_v55 }
 0x3a2   : > { %v640_v60 = vadd.f32 %v639_v58, %v560_v57 }
 0x3a3   : > { %v822_v61 = vmul.f32 -1.442695, %v645_v59 }
 0x3a4   : > { %v821_v62 = vmul.f32 -1.442695, %v640_v60 }
 0x3a5   : > { %922 = vpow2.f32 %v822_v61 }
 0x3a6   : > { %924 = vpow2.f32 %v821_v62 }
 0x3af   : > { %v923_v63 = vpop.eup %922 }
 0x3b0   : > { %v925_v0 = vpop.eup %924  ;;  %v655_v1 = vadd.f32 1.0, %v923_v63 }
 0x3b1   : > { %v654_v2 = vadd.f32 1.0, %v925_v0 }
 0x3b2   : > { %926 = vrcp.f32 %v655_v1 }
 0x3b3   : > { %928 = vrcp.f32 %v654_v2 }
 0x3bc   : > { %v927_v3 = vpop.eup %926 }
 0x3bd   : > { %v929_v4 = vpop.eup %928  ;;  %661 = vst [vmem:[%s257_s13 + $0x8] sm:$0xff] %v927_v3 }
 0x3be   : > { %660 = vst [vmem:[%s257_s13] sm:$0xff] %v929_v4 }
 0x3bf   : > { %971 = shalt.err (!%p968_p0)
}
 0x3c0   : > { %s972_s5 = scalar_lea.hbm %s1204_s27, 256  ;;  %s976_s10 = scalar_lea.hbm %s1252_s4, 512 }
 0x3c1   : > { %p973_p1 = scmp.ne.s32.totalorder %s1204_s27, %s972_s5  ;;  %p977_p4 = scmp.lt.u32.totalorder %s1204_s27, %s1252_s4 }
 0x3c2   : > { %p978_p5 = scmp.lt.u32.totalorder %s976_s10, %s972_s5  ;;  %p980_p10 = scmp.lt.u32.totalorder %s972_s5, %s1204_s27 }
 0x3c3   : > { %p974_p2 = pnand %p973_p1, %p1100_p6 }
 0x3c4   : > { %p979_p7 = por %p978_p5, %p977_p4 }
 0x3c5   : > { %p975_p3 = pneg %p974_p2 }
 0x3c6   : > { %p981_p11 = por %p980_p10, %p979_p7 }
 0x3c8   : > { %p982_p12 = pnand %p981_p11, %p975_p3 }
 0x3ca   : > { %985 = shalt.err (!%p982_p12)
}
 0x3cb   : > { %s1033_s13 = smov 128   ;;  %s1034_s20 = smov 256  }
 0x3cc   : > { %s1035_s22 = smov 8  }
 0x3cd   : > { %865 = dma.vmem_to_hbm [thread:$0]  (%p1100_p6), %s1199_s14, 256, %s1204_s27, %s668_s28, %s1033_s13, %s1034_s20, %s1035_s22  }
 0x3ce PF: > { %s708_s23 = sand.u32 1, %s1012_s15   ;;  %p869_p13 = pnand %p807_p9, %p1104_p8 }
 0x3cf   : > { %s709_s29 = scalar_lea.sflag [#allocation4], %s708_s23 }
 0x3d0   : > { %1003 = dma.done.wait (!%p869_p13), %s709_s29, 32  }
 0x3d1   : > { %1005 = vsyncadd (!%p869_p13), %s709_s29, 4294967264  ;;  %s718_s19 = scalar_lea.sflag [#allocation6], %s708_s23 }
 0x3d2   : > { %1007 = dma.done.wait (!%p869_p13), %s718_s19, 256  }
 0x3d3   : > { %1009 = vsyncadd (!%p869_p13), %s718_s19, 4294967040  ;;  %p18_p6 = scmp.ge.s32.totalorder %s1086_s21, 4   ;;  %s1255_s15 = smov %s1016_s16 }
 0x3d4   : > { %s1256_s16 = smov %s1020_s17  ;;  %s1257_s17 = smov %s1098_s24 }
 0x3d5   : > { %s1258_s18 = smov %s1086_s21  ;;  %20 = sbr.rel (!%p18_p6) target bundleno = 5 (0x5), region = 130 }
 0x3dc   :  { %723 = vsyncpa [#allocation4], 1 }
 0x3dd   :  { %725 = vsyncpa [#allocation4 + $0x1], 1 }
 0x3de   :  { %726 = vsyncpa [#allocation6], 1 }
 0x3df   :  { %728 = vsyncpa [#allocation6 + $0x1], 1 }

</bundles_post_ra>
